<compile_context>
chip_gen: v7x
topology: tpu7x:2x2x1
jax: 0.10.0
libtpu: 0.0.40
codegen_flags: <defaults>
</compile_context>

<pallas_src>
import functools

import jax
import jax.numpy as jnp
import numpy as np
from jax.experimental import pallas as pl
from jax.experimental.pallas import tpu as pltpu


def _cdiv(a, b):
    return -(-a // b)


# --------------------------------------------------------------------------
# Pallas kernel: masked cross-entropy partial sums (per row-shard)
# --------------------------------------------------------------------------
def _ce_partial_kernel(logits_ref, tgt_ref, acc_ref, *, ignore_index,
                       seg_width, n_seg, tiles_per_shard, n_rows):
    """Accumulate [sum(nll), count(valid)] into acc_ref lanes 0 / 1.

    logits_ref : (TR, n_seg * seg_width) -- n_seg logical rows packed per
                 lane row when seg_width < 128 (lane-dense layout).
    tgt_ref    : (TR, n_seg) int32 targets.
    acc_ref    : (1, 1, 128) float32 resident accumulator for this shard.
    """
    p = pl.program_id(0)
    i = pl.program_id(1)

    @pl.when(i == 0)
    def _():
        acc_ref[...] = jnp.zeros(acc_ref.shape, jnp.float32)

    logits = logits_ref[...].astype(jnp.float32)        # (TR, L), cast in VMEM
    tgt = tgt_ref[...].astype(jnp.int32)                # (TR, n_seg)
    tr, lanes = logits.shape

    # Global packed-row index of every sublane row in this tile.  Rows past
    # n_rows come from the (clamped) ragged tail block and are masked out, so
    # no wrapper-side jnp.pad of the logits is needed.  NOTE: uses the
    # *unclamped* tile index, so over-allocated (p, i) slots contribute 0.
    row_start = (p * tiles_per_shard + i) * tr
    row_idx = jax.lax.broadcasted_iota(jnp.int32, (tr, 1), 0) + row_start
    row_ok = row_idx < n_rows                           # (TR, 1)

    lane_idx = jax.lax.broadcasted_iota(jnp.int32, (tr, lanes), 1)
    neg_big = jnp.float32(-1e30)

    if n_seg == 1:
        # Unpacked path (C >= 128 or 128 % C != 0): one logical row per
        # sublane row -- already a single exp pass.
        t = tgt[:, 0:1]                                                   # (TR,1)
        m = jnp.max(logits, axis=-1, keepdims=True)
        e = jnp.exp(logits - m)
        lse = jnp.log(jnp.sum(e, axis=-1, keepdims=True)) + m
        onehot = lane_idx == t
        tgt_logit = jnp.sum(jnp.where(onehot, logits, 0.0), axis=-1,
                            keepdims=True)
        valid = row_ok & (t != ignore_index)
        total_nll = jnp.sum(jnp.where(valid, lse - tgt_logit, 0.0))
        total_cnt = jnp.sum(valid.astype(jnp.float32))
    else:
        # Lane-packed path: n_seg logical rows live side-by-side on one
        # 128-lane row.  Per-segment max (for numerical stability identical
        # to per-row max), ONE exp pass, per-segment denominator sums, and a
        # single fused masked sum for all target logits.
        seg_masks = []
        m_segs = []
        for s in range(n_seg):                          # n_seg <= 8, unrolled
            seg_mask = ((lane_idx >= s * seg_width) &
                        (lane_idx < (s + 1) * seg_width))
            seg_masks.append(seg_mask)
            m_segs.append(jnp.max(jnp.where(seg_mask, logits, neg_big),
                                  axis=-1, keepdims=True))               # (TR,1)

        # splice per-segment maxes into one per-lane max (VPU selects, cheap)
        m_full = jnp.where(seg_masks[0], m_segs[0], neg_big)
        for s in range(1, n_seg):
            m_full = jnp.where(seg_masks[s], m_segs[s], m_full)

        e = jnp.exp(logits - m_full)                    # single EUP pass

        total_nll = jnp.float32(0.0)
        total_cnt = jnp.float32(0.0)
        onehot_valid = None
        for s in range(n_seg):
            ssum = jnp.sum(jnp.where(seg_masks[s], e, 0.0), axis=-1,
                           keepdims=True)                                 # (TR,1)
            lse = jnp.log(ssum) + m_segs[s]
            t = tgt[:, s:s + 1]                                           # (TR,1)
            valid = row_ok & (t != ignore_index)
            total_nll += jnp.sum(jnp.where(valid, lse, 0.0))
            total_cnt += jnp.sum(valid.astype(jnp.float32))
            # Valid targets land inside segment s's lanes by construction;
            # invalid rows are masked by `valid`, so the union one-hot below
            # marks at most one lane per (row, segment).
            oh = (lane_idx == (t + s * seg_width)) & valid
            onehot_valid = oh if onehot_valid is None else (onehot_valid | oh)
        # one full-tile masked sum gathers every segment's target logit
        total_nll -= jnp.sum(jnp.where(onehot_valid, logits, 0.0))

    # fused lane-dense accumulator: lane 0 = sum(nll), lane 1 = valid count
    out_lane = jax.lax.broadcasted_iota(jnp.int32, acc_ref.shape, 2)
    contrib = jnp.where(out_lane == 0, total_nll,
                        jnp.where(out_lane == 1, total_cnt, 0.0))
    acc_ref[...] = acc_ref[...] + contrib


# --------------------------------------------------------------------------
# wrapper: (sum of nll over valid rows, number of valid rows)
# --------------------------------------------------------------------------
def _ce_partial_sums(logits2d, targets1d, *, ignore_index,
                     vmem_budget_bytes=4 * 1024 * 1024, num_row_shards=2):
    n, c = logits2d.shape
    targets1d = targets1d.astype(jnp.int32)

    # Lane-dense packing: fold k = 128 // C logical rows into one 128-lane
    # row when the reshape is free (contiguous, metadata-only).  ABINet
    # charsets are small, so C is usually << 128.
    k = 1
    if c < 128 and 128 % c == 0 and (128 // c) <= 8 and n % (128 // c) == 0:
        k = 128 // c
    rows = n // k
    lanes = k * c
    logits_p = logits2d.reshape(rows, lanes)
    tgt_p = targets1d.reshape(rows, k)

    # Tile sizing: double-buffered input tile stays under a conservative VMEM
    # budget (safe for v7x's 64 MiB physical / 32 MiB scoped default; v5e/v6e
    # have 128 MiB).  Cap at 2048 rows; 8-row granularity for strict tiles.
    itemsize = logits_p.dtype.itemsize
    bytes_per_row = lanes * itemsize
    budget_rows = max(8, (vmem_budget_bytes // (2 * bytes_per_row)) // 8 * 8)
    tile_rows = int(min(2048, budget_rows, rows))

    n_tiles = _cdiv(rows, tile_rows)
    shards = int(min(num_row_shards, n_tiles))      # 2 TCs on v7x megacore
    tiles_per_shard = _cdiv(n_tiles, shards)
    last_block = n_tiles - 1

    def in_map(p, i):
        # clamp so over-allocated (p, i) slots never issue an OOB block DMA;
        # the kernel masks their rows via the *unclamped* row index.
        return (jnp.minimum(p * tiles_per_shard + i, last_block), 0)

    kernel = functools.partial(
        _ce_partial_kernel, ignore_index=ignore_index, seg_width=c, n_seg=k,
        tiles_per_shard=tiles_per_shard, n_rows=rows)

    partials = pl.pallas_call(
        kernel,
        grid=(shards, tiles_per_shard),
        in_specs=[
            pl.BlockSpec((tile_rows, lanes), in_map),
            pl.BlockSpec((tile_rows, k), in_map),
        ],
        out_specs=pl.BlockSpec((1, 1, 128), lambda p, i: (p, 0, 0)),
        out_shape=jax.ShapeDtypeStruct((shards, 1, 128), jnp.float32),
        compiler_params=pltpu.CompilerParams(
            dimension_semantics=("parallel", "arbitrary")),
    )(logits_p, tgt_p)

    return jnp.sum(partials[:, 0, 0]), jnp.sum(partials[:, 0, 1])


# --------------------------------------------------------------------------
# ABINetLoss forward (glue around the Pallas CE kernel)
# --------------------------------------------------------------------------
def abinet_loss(pred, batch, *, smoothing=False, ignore_index=100,
                align_weight=1.0):
    # `smoothing` is stored but unused in the reference forward -> ignored.
    del smoothing
    targets = jnp.asarray(batch[1])
    tgt_flat = targets.reshape(-1)
    # ignore_index < 0 means "no ignore" in the reference ctor.
    ign = ignore_index if ignore_index >= 0 else -(2 ** 31) + 1

    loss = {}
    loss_sum = []
    for name, logits in pred.items():
        items = list(logits) if isinstance(logits, (list, tuple)) else [logits]
        if not items:
            continue
        # No concat of list logits: run the (sum, count) kernel per element
        # (reusing the same targets) and combine.  mean(concat) == Σs / Σc.
        s_tot = jnp.float32(0.0)
        c_tot = jnp.float32(0.0)
        for lg in items:
            s, c = _ce_partial_sums(lg.reshape(-1, lg.shape[2]), tgt_flat,
                                    ignore_index=ign)
            s_tot = s_tot + s
            c_tot = c_tot + c
        w = align_weight if name == "align" else 1.0
        # NOTE: if every target is ignored, c_tot == 0 and this is NaN --
        # identical to torch.nn.CrossEntropyLoss(reduction='mean') semantics.
        val = (s_tot / c_tot) * w
        loss[name + "_loss"] = val
        loss_sum.append(val)
    loss["loss"] = sum(loss_sum)
    return loss


# --------------------------------------------------------------------------
# pure-JAX reference (mirrors the PyTorch module, incl. the concat path)
# --------------------------------------------------------------------------
def _ref_ce_mean(logits, targets, ignore_index):
    logits = logits.astype(jnp.float32)
    lse = jax.scipy.special.logsumexp(logits, axis=-1)
    safe_t = jnp.clip(targets, 0, logits.shape[-1] - 1)
    tgt_logit = jnp.take_along_axis(logits, safe_t[:, None], axis=-1)[:, 0]
    valid = targets != ignore_index
    nll = jnp.where(valid, lse - tgt_logit, 0.0)
    return jnp.sum(nll) / jnp.sum(valid.astype(jnp.float32))


def _ref_abinet_loss(pred, batch, *, ignore_index, align_weight):
    targets = batch[1]
    out = {}
    total = jnp.float32(0.0)
    for name, logits in pred.items():
        if isinstance(logits, (list, tuple)):
            all_t = jnp.concatenate([targets] * len(logits), 0)
            all_l = jnp.concatenate(list(logits), 0)
            fl, ft = all_l.reshape(-1, all_l.shape[2]), all_t.reshape(-1)
        else:
            fl, ft = logits.reshape(-1, logits.shape[2]), targets.reshape(-1)
        v = _ref_ce_mean(fl, ft, ignore_index)
        v = v * (align_weight if name == "align" else 1.0)
        out[name + "_loss"] = v
        total = total + v
    out["loss"] = total
    return out


# --------------------------------------------------------------------------
if __name__ == "__main__":
    key = jax.random.PRNGKey(0)
    B, T, C = 2, 8, 32  # batch, seq len, num classes
    IGNORE = 100

    k1, k2, k3, k4, k5, k6 = jax.random.split(key, 6)

    # predictions: 'align' & 'vision' are single tensors, 'lang' is a list of 2
    pred = {
        "align": jax.random.normal(k1, (B, T, C), jnp.float32),
        "lang": [
            jax.random.normal(k2, (B, T, C), jnp.float32),
            jax.random.normal(k3, (B, T, C), jnp.float32),
        ],
        "vision": jax.random.normal(k4, (B, T, C), jnp.float32),
    }

    # targets: labels in [0, C), with some positions set to ignore_index
    tgt = jax.random.randint(k5, (B, T), 0, C, jnp.int32)
    ignore_mask = jax.random.bernoulli(k6, 0.25, (B, T))
    tgt = jnp.where(ignore_mask, IGNORE, tgt)

    batch = (None, tgt)  # batch[1] carries the labels, as in the PyTorch module

    out = abinet_loss(pred, batch, ignore_index=IGNORE, align_weight=1.0)
    out = jax.tree_util.tree_map(jax.block_until_ready, out)

    # correctness check against a pure-JAX reference (lane-packed path, C=32)
    ref = _ref_abinet_loss(pred, batch, ignore_index=IGNORE, align_weight=1.0)
    for name in ref:
        np.testing.assert_allclose(np.asarray(out[name]), np.asarray(ref[name]),
                                   rtol=1e-5, atol=1e-5)

    # also exercise the non-lane-packed fallback path (C does not divide 128)
    C2 = 37
    lg2 = jax.random.normal(k1, (B, T, C2), jnp.float32)
    t2 = jnp.where(ignore_mask, IGNORE,
                   jax.random.randint(k5, (B, T), 0, C2, jnp.int32))
    s2, c2 = _ce_partial_sums(lg2.reshape(-1, C2), t2.reshape(-1),
                              ignore_index=IGNORE)
    got2 = jax.block_until_ready(s2 / c2)
    want2 = _ref_ce_mean(lg2.reshape(-1, C2), t2.reshape(-1), IGNORE)
    np.testing.assert_allclose(np.asarray(got2), np.asarray(want2),
                               rtol=1e-5, atol=1e-5)

    print("KERNEL_OK")
</pallas_src>

<mosaic_0001>
module attributes {stable_mosaic.version = 11 : i64} {
  func.func @_ce_partial_kernel(%arg0: i32, %arg1: i32, %arg2: memref<4x128xf32, #tpu.memory_space<vmem>>, %arg3: memref<4x4xi32, #tpu.memory_space<vmem>>, %arg4: memref<1x1x128xf32, #tpu.memory_space<vmem>>) attributes {dimension_semantics = [#tpu.dimension_semantics<parallel>, #tpu.dimension_semantics<arbitrary>], iteration_bounds = array<i64: 1, 1>, scalar_prefetch = 0 : i64, scratch_operands = 0 : i64, tpu.core_type = #tpu.core_type<tc>, window_params = [{transform_indices = @transform_0, window_bounds = array<i64: 4, 128>}, {transform_indices = @transform_1, window_bounds = array<i64: 4, 4>}, {transform_indices = @transform_2, window_bounds = array<i64: 1, 1, 128>}]} {
    %c0_i32 = arith.constant 0 : i32
    %0 = arith.cmpi eq, %arg1, %c0_i32 : i32
    %1 = arith.extui %0 : i1 to i32
    %c0_i32_0 = arith.constant 0 : i32
    %2 = arith.cmpi ne, %1, %c0_i32_0 : i32
    scf.if %2 {
      %cst_57 = arith.constant 0.000000e+00 : f32
      %208 = vector.broadcast %cst_57 : f32 to vector<1x1x128xf32>
      %c0_58 = arith.constant 0 : index
      %c0_59 = arith.constant 0 : index
      %c0_60 = arith.constant 0 : index
      %209 = vector.load %arg4[%c0_58, %c0_59, %c0_60] : memref<1x1x128xf32, #tpu.memory_space<vmem>>, vector<1x1x128xf32>
      tpu.vector_store %arg4[%c0_58, %c0_59, %c0_60], %208 {strides = array<i32>} : memref<1x1x128xf32, #tpu.memory_space<vmem>>, vector<1x1x128xf32>,
    } else {
    }
    %c0 = arith.constant 0 : index
    %c0_1 = arith.constant 0 : index
    %3 = vector.load %arg2[%c0, %c0_1] : memref<4x128xf32, #tpu.memory_space<vmem>>, vector<4x128xf32>
    %c0_2 = arith.constant 0 : index
    %c0_3 = arith.constant 0 : index
    %4 = vector.load %arg3[%c0_2, %c0_3] : memref<4x4xi32, #tpu.memory_space<vmem>>, vector<4x4xi32>
    %c1_i32 = arith.constant 1 : i32
    %5 = arith.muli %arg0, %c1_i32 : i32
    %6 = arith.addi %5, %arg1 : i32
    %c4_i32 = arith.constant 4 : i32
    %7 = arith.muli %6, %c4_i32 : i32
    %8 = tpu.iota {dimensions = array<i32: 0>} : vector<4x1xi32>
    %9 = vector.broadcast %7 : i32 to vector<4x1xi32>
    %10 = arith.addi %8, %9 : vector<4x1xi32>
    %c4_i32_4 = arith.constant 4 : i32
    %11 = vector.broadcast %c4_i32_4 : i32 to vector<4x1xi32>
    %12 = arith.cmpi slt, %10, %11 : vector<4x1xi32>
    %13 = tpu.iota {dimensions = array<i32: 1>} : vector<4x128xi32>
    %c0_i32_5 = arith.constant 0 : i32
    %14 = vector.broadcast %c0_i32_5 : i32 to vector<4x128xi32>
    %15 = arith.cmpi sge, %13, %14 : vector<4x128xi32>
    %c32_i32 = arith.constant 32 : i32
    %16 = vector.broadcast %c32_i32 : i32 to vector<4x128xi32>
    %17 = arith.cmpi slt, %13, %16 : vector<4x128xi32>
    %18 = arith.andi %15, %17 : vector<4x128xi1>
    %cst = arith.constant -1.000000e+30 : f32
    %19 = vector.broadcast %cst : f32 to vector<4x128xf32>
    %20 = arith.select %18, %3, %19 : vector<4x128xi1>, vector<4x128xf32>
    %cst_6 = arith.constant dense<0xFF800000> : vector<4xf32>
    %21 = vector.multi_reduction <maximumf>, %20, %cst_6 [1] : vector<4x128xf32> to vector<4xf32>
    %22 = vector.shape_cast %21 : vector<4xf32> to vector<4x1xf32>
    %c32_i32_7 = arith.constant 32 : i32
    %23 = vector.broadcast %c32_i32_7 : i32 to vector<4x128xi32>
    %24 = arith.cmpi sge, %13, %23 : vector<4x128xi32>
    %c64_i32 = arith.constant 64 : i32
    %25 = vector.broadcast %c64_i32 : i32 to vector<4x128xi32>
    %26 = arith.cmpi slt, %13, %25 : vector<4x128xi32>
    %27 = arith.andi %24, %26 : vector<4x128xi1>
    %cst_8 = arith.constant -1.000000e+30 : f32
    %28 = vector.broadcast %cst_8 : f32 to vector<4x128xf32>
    %29 = arith.select %27, %3, %28 : vector<4x128xi1>, vector<4x128xf32>
    %cst_9 = arith.constant dense<0xFF800000> : vector<4xf32>
    %30 = vector.multi_reduction <maximumf>, %29, %cst_9 [1] : vector<4x128xf32> to vector<4xf32>
    %31 = vector.shape_cast %30 : vector<4xf32> to vector<4x1xf32>
    %c64_i32_10 = arith.constant 64 : i32
    %32 = vector.broadcast %c64_i32_10 : i32 to vector<4x128xi32>
    %33 = arith.cmpi sge, %13, %32 : vector<4x128xi32>
    %c96_i32 = arith.constant 96 : i32
    %34 = vector.broadcast %c96_i32 : i32 to vector<4x128xi32>
    %35 = arith.cmpi slt, %13, %34 : vector<4x128xi32>
    %36 = arith.andi %33, %35 : vector<4x128xi1>
    %cst_11 = arith.constant -1.000000e+30 : f32
    %37 = vector.broadcast %cst_11 : f32 to vector<4x128xf32>
    %38 = arith.select %36, %3, %37 : vector<4x128xi1>, vector<4x128xf32>
    %cst_12 = arith.constant dense<0xFF800000> : vector<4xf32>
    %39 = vector.multi_reduction <maximumf>, %38, %cst_12 [1] : vector<4x128xf32> to vector<4xf32>
    %40 = vector.shape_cast %39 : vector<4xf32> to vector<4x1xf32>
    %c96_i32_13 = arith.constant 96 : i32
    %41 = vector.broadcast %c96_i32_13 : i32 to vector<4x128xi32>
    %42 = arith.cmpi sge, %13, %41 : vector<4x128xi32>
    %c128_i32 = arith.constant 128 : i32
    %43 = vector.broadcast %c128_i32 : i32 to vector<4x128xi32>
    %44 = arith.cmpi slt, %13, %43 : vector<4x128xi32>
    %45 = arith.andi %42, %44 : vector<4x128xi1>
    %cst_14 = arith.constant -1.000000e+30 : f32
    %46 = vector.broadcast %cst_14 : f32 to vector<4x128xf32>
    %47 = arith.select %45, %3, %46 : vector<4x128xi1>, vector<4x128xf32>
    %cst_15 = arith.constant dense<0xFF800000> : vector<4xf32>
    %48 = vector.multi_reduction <maximumf>, %47, %cst_15 [1] : vector<4x128xf32> to vector<4xf32>
    %49 = vector.shape_cast %48 : vector<4xf32> to vector<4x1xf32>
    %cst_16 = arith.constant -1.000000e+30 : f32
    %50 = vector.shape_cast %22 : vector<4x1xf32> to vector<4x1xf32>
    %51 = vector.broadcast %50 : vector<4x1xf32> to vector<4x128xf32>
    %52 = vector.broadcast %cst_16 : f32 to vector<4x128xf32>
    %53 = arith.select %18, %51, %52 : vector<4x128xi1>, vector<4x128xf32>
    %54 = vector.shape_cast %31 : vector<4x1xf32> to vector<4x1xf32>
    %55 = vector.broadcast %54 : vector<4x1xf32> to vector<4x128xf32>
    %56 = arith.select %27, %55, %53 : vector<4x128xi1>, vector<4x128xf32>
    %57 = vector.shape_cast %40 : vector<4x1xf32> to vector<4x1xf32>
    %58 = vector.broadcast %57 : vector<4x1xf32> to vector<4x128xf32>
    %59 = arith.select %36, %58, %56 : vector<4x128xi1>, vector<4x128xf32>
    %60 = vector.shape_cast %49 : vector<4x1xf32> to vector<4x1xf32>
    %61 = vector.broadcast %60 : vector<4x1xf32> to vector<4x128xf32>
    %62 = arith.select %45, %61, %59 : vector<4x128xi1>, vector<4x128xf32>
    %63 = arith.subf %3, %62 : vector<4x128xf32>
    %64 = math.exp %63 : vector<4x128xf32>
    %cst_17 = arith.constant 0.000000e+00 : f32
    %65 = vector.broadcast %cst_17 : f32 to vector<4x128xf32>
    %66 = arith.select %18, %64, %65 : vector<4x128xi1>, vector<4x128xf32>
    %cst_18 = arith.constant dense<0.000000e+00> : vector<4xf32>
    %67 = vector.multi_reduction <add>, %66, %cst_18 [1] : vector<4x128xf32> to vector<4xf32>
    %68 = vector.shape_cast %67 : vector<4xf32> to vector<4x1xf32>
    %69 = math.log %68 : vector<4x1xf32>
    %70 = arith.addf %69, %22 : vector<4x1xf32>
    %71 = vector.extract_strided_slice %4 {offsets = [0, 0], sizes = [4, 1], strides = [1, 1]} : vector<4x4xi32> to vector<4x1xi32>
    %c100_i32 = arith.constant 100 : i32
    %72 = vector.broadcast %c100_i32 : i32 to vector<4x1xi32>
    %73 = arith.cmpi ne, %71, %72 : vector<4x1xi32>
    %74 = arith.andi %12, %73 : vector<4x1xi1>
    %cst_19 = arith.constant 0.000000e+00 : f32
    %75 = vector.broadcast %cst_19 : f32 to vector<4x1xf32>
    %76 = arith.select %74, %70, %75 : vector<4x1xi1>, vector<4x1xf32>
    %77 = vector.shape_cast %76 : vector<4x1xf32> to vector<1x4x1xf32>
    %cst_20 = arith.constant dense<0.000000e+00> : vector<1xf32>
    %78 = vector.multi_reduction <add>, %77, %cst_20 [1, 2] : vector<1x4x1xf32> to vector<1xf32>
    %79 = vector.shape_cast %78 : vector<1xf32> to vector<1x1x1xf32>
    %80 = vector.extract %79[0, 0, 0] : f32 from vector<1x1x1xf32>
    %cst_21 = arith.constant 0.000000e+00 : f32
    %81 = arith.addf %cst_21, %80 : f32
    %82 = arith.extui %74 : vector<4x1xi1> to vector<4x1xi32>
    %83 = arith.sitofp %82 : vector<4x1xi32> to vector<4x1xf32>
    %84 = vector.shape_cast %83 : vector<4x1xf32> to vector<1x4x1xf32>
    %cst_22 = arith.constant dense<0.000000e+00> : vector<1xf32>
    %85 = vector.multi_reduction <add>, %84, %cst_22 [1, 2] : vector<1x4x1xf32> to vector<1xf32>
    %86 = vector.shape_cast %85 : vector<1xf32> to vector<1x1x1xf32>
    %87 = vector.extract %86[0, 0, 0] : f32 from vector<1x1x1xf32>
    %cst_23 = arith.constant 0.000000e+00 : f32
    %88 = arith.addf %cst_23, %87 : f32
    %c0_i32_24 = arith.constant 0 : i32
    %89 = vector.broadcast %c0_i32_24 : i32 to vector<4x1xi32>
    %90 = arith.addi %71, %89 : vector<4x1xi32>
    %91 = vector.broadcast %90 : vector<4x1xi32> to vector<4x128xi32>
    %92 = arith.cmpi eq, %13, %91 : vector<4x128xi32>
    %93 = vector.broadcast %74 : vector<4x1xi1> to vector<4x128xi1>
    %94 = arith.andi %92, %93 : vector<4x128xi1>
    %cst_25 = arith.constant 0.000000e+00 : f32
    %95 = vector.broadcast %cst_25 : f32 to vector<4x128xf32>
    %96 = arith.select %27, %64, %95 : vector<4x128xi1>, vector<4x128xf32>
    %cst_26 = arith.constant dense<0.000000e+00> : vector<4xf32>
    %97 = vector.multi_reduction <add>, %96, %cst_26 [1] : vector<4x128xf32> to vector<4xf32>
    %98 = vector.shape_cast %97 : vector<4xf32> to vector<4x1xf32>
    %99 = math.log %98 : vector<4x1xf32>
    %100 = arith.addf %99, %31 : vector<4x1xf32>
    %101 = vector.extract_strided_slice %4 {offsets = [0, 1], sizes = [4, 1], strides = [1, 1]} : vector<4x4xi32> to vector<4x1xi32>
    %c100_i32_27 = arith.constant 100 : i32
    %102 = vector.broadcast %c100_i32_27 : i32 to vector<4x1xi32>
    %103 = arith.cmpi ne, %101, %102 : vector<4x1xi32>
    %104 = arith.andi %12, %103 : vector<4x1xi1>
    %cst_28 = arith.constant 0.000000e+00 : f32
    %105 = vector.broadcast %cst_28 : f32 to vector<4x1xf32>
    %106 = arith.select %104, %100, %105 : vector<4x1xi1>, vector<4x1xf32>
    %107 = vector.shape_cast %106 : vector<4x1xf32> to vector<1x4x1xf32>
    %cst_29 = arith.constant dense<0.000000e+00> : vector<1xf32>
    %108 = vector.multi_reduction <add>, %107, %cst_29 [1, 2] : vector<1x4x1xf32> to vector<1xf32>
    %109 = vector.shape_cast %108 : vector<1xf32> to vector<1x1x1xf32>
    %110 = vector.extract %109[0, 0, 0] : f32 from vector<1x1x1xf32>
    %111 = arith.addf %81, %110 : f32
    %112 = arith.extui %104 : vector<4x1xi1> to vector<4x1xi32>
    %113 = arith.sitofp %112 : vector<4x1xi32> to vector<4x1xf32>
    %114 = vector.shape_cast %113 : vector<4x1xf32> to vector<1x4x1xf32>
    %cst_30 = arith.constant dense<0.000000e+00> : vector<1xf32>
    %115 = vector.multi_reduction <add>, %114, %cst_30 [1, 2] : vector<1x4x1xf32> to vector<1xf32>
    %116 = vector.shape_cast %115 : vector<1xf32> to vector<1x1x1xf32>
    %117 = vector.extract %116[0, 0, 0] : f32 from vector<1x1x1xf32>
    %118 = arith.addf %88, %117 : f32
    %c32_i32_31 = arith.constant 32 : i32
    %119 = vector.broadcast %c32_i32_31 : i32 to vector<4x1xi32>
    %120 = arith.addi %101, %119 : vector<4x1xi32>
    %121 = vector.broadcast %120 : vector<4x1xi32> to vector<4x128xi32>
    %122 = arith.cmpi eq, %13, %121 : vector<4x128xi32>
    %123 = vector.broadcast %104 : vector<4x1xi1> to vector<4x128xi1>
    %124 = arith.andi %122, %123 : vector<4x128xi1>
    %125 = arith.ori %94, %124 : vector<4x128xi1>
    %cst_32 = arith.constant 0.000000e+00 : f32
    %126 = vector.broadcast %cst_32 : f32 to vector<4x128xf32>
    %127 = arith.select %36, %64, %126 : vector<4x128xi1>, vector<4x128xf32>
    %cst_33 = arith.constant dense<0.000000e+00> : vector<4xf32>
    %128 = vector.multi_reduction <add>, %127, %cst_33 [1] : vector<4x128xf32> to vector<4xf32>
    %129 = vector.shape_cast %128 : vector<4xf32> to vector<4x1xf32>
    %130 = math.log %129 : vector<4x1xf32>
    %131 = arith.addf %130, %40 : vector<4x1xf32>
    %132 = vector.extract_strided_slice %4 {offsets = [0, 2], sizes = [4, 1], strides = [1, 1]} : vector<4x4xi32> to vector<4x1xi32>
    %c100_i32_34 = arith.constant 100 : i32
    %133 = vector.broadcast %c100_i32_34 : i32 to vector<4x1xi32>
    %134 = arith.cmpi ne, %132, %133 : vector<4x1xi32>
    %135 = arith.andi %12, %134 : vector<4x1xi1>
    %cst_35 = arith.constant 0.000000e+00 : f32
    %136 = vector.broadcast %cst_35 : f32 to vector<4x1xf32>
    %137 = arith.select %135, %131, %136 : vector<4x1xi1>, vector<4x1xf32>
    %138 = vector.shape_cast %137 : vector<4x1xf32> to vector<1x4x1xf32>
    %cst_36 = arith.constant dense<0.000000e+00> : vector<1xf32>
    %139 = vector.multi_reduction <add>, %138, %cst_36 [1, 2] : vector<1x4x1xf32> to vector<1xf32>
    %140 = vector.shape_cast %139 : vector<1xf32> to vector<1x1x1xf32>
    %141 = vector.extract %140[0, 0, 0] : f32 from vector<1x1x1xf32>
    %142 = arith.addf %111, %141 : f32
    %143 = arith.extui %135 : vector<4x1xi1> to vector<4x1xi32>
    %144 = arith.sitofp %143 : vector<4x1xi32> to vector<4x1xf32>
    %145 = vector.shape_cast %144 : vector<4x1xf32> to vector<1x4x1xf32>
    %cst_37 = arith.constant dense<0.000000e+00> : vector<1xf32>
    %146 = vector.multi_reduction <add>, %145, %cst_37 [1, 2] : vector<1x4x1xf32> to vector<1xf32>
    %147 = vector.shape_cast %146 : vector<1xf32> to vector<1x1x1xf32>
    %148 = vector.extract %147[0, 0, 0] : f32 from vector<1x1x1xf32>
    %149 = arith.addf %118, %148 : f32
    %c64_i32_38 = arith.constant 64 : i32
    %150 = vector.broadcast %c64_i32_38 : i32 to vector<4x1xi32>
    %151 = arith.addi %132, %150 : vector<4x1xi32>
    %152 = vector.broadcast %151 : vector<4x1xi32> to vector<4x128xi32>
    %153 = arith.cmpi eq, %13, %152 : vector<4x128xi32>
    %154 = vector.broadcast %135 : vector<4x1xi1> to vector<4x128xi1>
    %155 = arith.andi %153, %154 : vector<4x128xi1>
    %156 = arith.ori %125, %155 : vector<4x128xi1>
    %cst_39 = arith.constant 0.000000e+00 : f32
    %157 = vector.broadcast %cst_39 : f32 to vector<4x128xf32>
    %158 = arith.select %45, %64, %157 : vector<4x128xi1>, vector<4x128xf32>
    %cst_40 = arith.constant dense<0.000000e+00> : vector<4xf32>
    %159 = vector.multi_reduction <add>, %158, %cst_40 [1] : vector<4x128xf32> to vector<4xf32>
    %160 = vector.shape_cast %159 : vector<4xf32> to vector<4x1xf32>
    %161 = math.log %160 : vector<4x1xf32>
    %162 = arith.addf %161, %49 : vector<4x1xf32>
    %163 = vector.extract_strided_slice %4 {offsets = [0, 3], sizes = [4, 1], strides = [1, 1]} : vector<4x4xi32> to vector<4x1xi32>
    %c100_i32_41 = arith.constant 100 : i32
    %164 = vector.broadcast %c100_i32_41 : i32 to vector<4x1xi32>
    %165 = arith.cmpi ne, %163, %164 : vector<4x1xi32>
    %166 = arith.andi %12, %165 : vector<4x1xi1>
    %cst_42 = arith.constant 0.000000e+00 : f32
    %167 = vector.broadcast %cst_42 : f32 to vector<4x1xf32>
    %168 = arith.select %166, %162, %167 : vector<4x1xi1>, vector<4x1xf32>
    %169 = vector.shape_cast %168 : vector<4x1xf32> to vector<1x4x1xf32>
    %cst_43 = arith.constant dense<0.000000e+00> : vector<1xf32>
    %170 = vector.multi_reduction <add>, %169, %cst_43 [1, 2] : vector<1x4x1xf32> to vector<1xf32>
    %171 = vector.shape_cast %170 : vector<1xf32> to vector<1x1x1xf32>
    %172 = vector.extract %171[0, 0, 0] : f32 from vector<1x1x1xf32>
    %173 = arith.addf %142, %172 : f32
    %174 = arith.extui %166 : vector<4x1xi1> to vector<4x1xi32>
    %175 = arith.sitofp %174 : vector<4x1xi32> to vector<4x1xf32>
    %176 = vector.shape_cast %175 : vector<4x1xf32> to vector<1x4x1xf32>
    %cst_44 = arith.constant dense<0.000000e+00> : vector<1xf32>
    %177 = vector.multi_reduction <add>, %176, %cst_44 [1, 2] : vector<1x4x1xf32> to vector<1xf32>
    %178 = vector.shape_cast %177 : vector<1xf32> to vector<1x1x1xf32>
    %179 = vector.extract %178[0, 0, 0] : f32 from vector<1x1x1xf32>
    %180 = arith.addf %149, %179 : f32
    %c96_i32_45 = arith.constant 96 : i32
    %181 = vector.broadcast %c96_i32_45 : i32 to vector<4x1xi32>
    %182 = arith.addi %163, %181 : vector<4x1xi32>
    %183 = vector.broadcast %182 : vector<4x1xi32> to vector<4x128xi32>
    %184 = arith.cmpi eq, %13, %183 : vector<4x128xi32>
    %185 = vector.broadcast %166 : vector<4x1xi1> to vector<4x128xi1>
    %186 = arith.andi %184, %185 : vector<4x128xi1>
    %187 = arith.ori %156, %186 : vector<4x128xi1>
    %cst_46 = arith.constant 0.000000e+00 : f32
    %188 = vector.broadcast %cst_46 : f32 to vector<4x128xf32>
    %189 = arith.select %187, %3, %188 : vector<4x128xi1>, vector<4x128xf32>
    %190 = vector.shape_cast %189 : vector<4x128xf32> to vector<1x4x128xf32>
    %cst_47 = arith.constant dense<0.000000e+00> : vector<1xf32>
    %191 = vector.multi_reduction <add>, %190, %cst_47 [1, 2] : vector<1x4x128xf32> to vector<1xf32>
    %192 = vector.shape_cast %191 : vector<1xf32> to vector<1x1x1xf32>
    %193 = vector.extract %192[0, 0, 0] : f32 from vector<1x1x1xf32>
    %194 = arith.subf %173, %193 : f32
    %195 = tpu.iota {dimensions = array<i32: 2>} : vector<1x1x128xi32>
    %c0_i32_48 = arith.constant 0 : i32
    %196 = vector.broadcast %c0_i32_48 : i32 to vector<1x1x128xi32>
    %197 = arith.cmpi eq, %195, %196 : vector<1x1x128xi32>
    %c1_i32_49 = arith.constant 1 : i32
    %198 = vector.broadcast %c1_i32_49 : i32 to vector<1x1x128xi32>
    %199 = arith.cmpi eq, %195, %198 : vector<1x1x128xi32>
    %cst_50 = arith.constant 0.000000e+00 : f32
    %200 = vector.broadcast %180 : f32 to vector<1x1x128xf32>
    %201 = vector.broadcast %cst_50 : f32 to vector<1x1x128xf32>
    %202 = arith.select %199, %200, %201 : vector<1x1x128xi1>, vector<1x1x128xf32>
    %203 = vector.broadcast %194 : f32 to vector<1x1x128xf32>
    %204 = arith.select %197, %203, %202 : vector<1x1x128xi1>, vector<1x1x128xf32>
    %c0_51 = arith.constant 0 : index
    %c0_52 = arith.constant 0 : index
    %c0_53 = arith.constant 0 : index
    %205 = vector.load %arg4[%c0_51, %c0_52, %c0_53] : memref<1x1x128xf32, #tpu.memory_space<vmem>>, vector<1x1x128xf32>
    %206 = arith.addf %205, %204 : vector<1x1x128xf32>
    %c0_54 = arith.constant 0 : index
    %c0_55 = arith.constant 0 : index
    %c0_56 = arith.constant 0 : index
    %207 = vector.load %arg4[%c0_54, %c0_55, %c0_56] : memref<1x1x128xf32, #tpu.memory_space<vmem>>, vector<1x1x128xf32>
    tpu.vector_store %arg4[%c0_54, %c0_55, %c0_56], %206 {strides = array<i32>} : memref<1x1x128xf32, #tpu.memory_space<vmem>>, vector<1x1x128xf32>,
    return
  }
  func.func @transform_0(%arg0: i32, %arg1: i32) -> (i32, i32) {
    %c1_i32 = arith.constant 1 : i32
    %0 = arith.muli %arg0, %c1_i32 : i32
    %1 = arith.addi %0, %arg1 : i32
    %c0_i32 = arith.constant 0 : i32
    %2 = arith.minsi %1, %c0_i32 : i32
    %c0_i32_0 = arith.constant 0 : i32
    %c0_i32_1 = arith.constant 0 : i32
    return %2, %c0_i32_0 : i32, i32
  }
  func.func @transform_1(%arg0: i32, %arg1: i32) -> (i32, i32) {
    %c1_i32 = arith.constant 1 : i32
    %0 = arith.muli %arg0, %c1_i32 : i32
    %1 = arith.addi %0, %arg1 : i32
    %c0_i32 = arith.constant 0 : i32
    %2 = arith.minsi %1, %c0_i32 : i32
    %c0_i32_0 = arith.constant 0 : i32
    %c0_i32_1 = arith.constant 0 : i32
    return %2, %c0_i32_0 : i32, i32
  }
  func.func @transform_2(%arg0: i32, %arg1: i32) -> (i32, i32, i32) {
    %c0_i32 = arith.constant 0 : i32
    %c0_i32_0 = arith.constant 0 : i32
    %c0_i32_1 = arith.constant 0 : i32
    return %arg0, %c0_i32, %c0_i32_0 : i32, i32, i32
  }
}

</mosaic_0001>

<bundles_post_ra>
// kernel: tpu_custom_call.1
= control target key start
LH: loop header
LB: loop body
LE: loop exit
PB: predicated region body
PF: predicated region fallthrough
CT: control target
= control target key end

     0   :  { %7 = vsyncpa [#allocation3], 0  ;;  %s652_s0 = inlined_call_operand.hbm [shape: f32[4,128], index: 0, kind: input, shape index: {}]   ;;  %s653_s1 = inlined_call_operand.hbm [shape: s32[4,4], index: 1, kind: input, shape index: {}]   ;;  %s654_s2 = inlined_call_operand.hbm [shape: f32[1,1,128], index: 2, kind: output, shape index: {}]  }
   0x1   :  { %8 = vsyncpa [#allocation6], 0 }
   0x2   :  { %9 = vsyncpa [#allocation4], 0  ;;  %s453_s9 = smov [#allocation2]   ;;  %s454_s11 = smov [#allocation5]  }
   0x3   :  { %s21_s10 = sshll.u32 %s453_s9, 4  ;;  %s36_s12 = sshll.u32 %s454_s11, 4  ;;  %s22_s10 = int_to_ptr.vmem [resolvable:$true] %s21_s10  ;;  %s37_s12 = int_to_ptr.vmem [resolvable:$true] %s36_s12 }
   0x4   :  { %s381_s15 = scalar_lea.hbm %s652_s0, 64 }
   0x5   :  { %p382_p0 = scmp.ne.s32.totalorder %s652_s0, %s381_s15  ;;  %p385_p1 = scmp.lt.u32.totalorder %s381_s15, %s652_s0 }
   0x7   :  { %p387_p2 = pnand %p385_p1, %p382_p0 }
   0x9   :  { %390 = shalt.err (!%p387_p2)
}
   0xa   :  { %s391_s20 = scalar_lea.vmem %s22_s10, 64  ;;  %p396_p4 = scmp.lt.s32.totalorder %s22_s10, %s22_s10 }
   0xb   :  { %p392_p3 = scmp.ne.s32.totalorder %s22_s10, %s391_s20  ;;  %p397_p5 = scmp.lt.s32.totalorder %s391_s20, %s391_s20 }
   0xd   :  { %p398_p6 = por %p397_p5, %p396_p4 }
   0xf   :  { %p399_p7 = pnand %p398_p6, %p392_p3 }
  0x11   :  { %402 = shalt.err (!%p399_p7)
}
  0x12   :  { %24 = dma.hbm_to_vmem [thread:$0]  %s652_s0, 64, %s22_s10, [#allocation3]  }
  0x13   :  { %s403_s25 = scalar_lea.hbm %s653_s1, 64 }
  0x14   :  { %p404_p8 = scmp.ne.s32.totalorder %s653_s1, %s403_s25  ;;  %p407_p9 = scmp.lt.u32.totalorder %s403_s25, %s653_s1 }
  0x16   :  { %p409_p10 = pnand %p407_p9, %p404_p8 }
  0x18   :  { %412 = shalt.err (!%p409_p10)
}
  0x19   :  { %s413_s30 = scalar_lea.vmem %s37_s12, 64  ;;  %p418_p12 = scmp.lt.s32.totalorder %s37_s12, %s37_s12 }
  0x1a   :  { %p414_p11 = scmp.ne.s32.totalorder %s37_s12, %s413_s30  ;;  %p419_p13 = scmp.lt.s32.totalorder %s413_s30, %s413_s30 }
  0x1c   :  { %p420_p0 = por %p419_p13, %p418_p12 }
  0x1e   :  { %p421_p1 = pnand %p420_p0, %p414_p11 }
  0x20   :  { %424 = shalt.err (!%p421_p1)
}
  0x21   :  { %39 = dma.hbm_to_vmem [thread:$0]  %s653_s1, 64, %s37_s12, [#allocation6]  }
  0x22   :  { %447 = dma.done.wait [#allocation3], 64  }
  0x23   :  { %448 = vsyncadd [#allocation3], 4294967232 }
  0x24   :  { %449 = dma.done.wait [#allocation6], 64  }
  0x25   :  { %450 = vsyncadd [#allocation6], 4294967232  ;;  %v61_v0 = vlaneseq  ;;  %v455_v1 = vmov 0.0   ;;  %v456_v3 = vmov 0   ;;  %vm72_vm6 = vcmask 1043456   ;;  %s459_s1 = smov 127  }
  0x26   :  { %56 = vst [vmem:[#allocation7] sm:$0x1] %v455_v1  ;;  %364 = vset.pattern.permute.xlu1 %v456_v3  ;;  %365 = vset.pattern.permute.xlu0 %v456_v3  ;;  %v519_v7 = vld [vmem:[#allocation2] sm:$0xf]  ;;  %v58_v8 = vld [vmem:[#allocation5] sm:$0xf] }
  0x27   :  { %v503_v2 = vand.u32 127, %v61_v0  ;;  %v62_v4 = vshrl.u32 %v61_v0, 7  ;;  %vm111_vm10 = vcmp.ne.s32.totalorder %v58_v8, 100  ;;  %vm114_vm12 = vcmask 3072   ;;  %s461_s4 = smov 126   ;;  %s462_s5 = smov 125  }
  0x28   :  { %v457_v21 = vmov 1   ;;  %v458_v22 = vmov 2   ;;  %v186_v42 = vadd.s32 32, %v58_v8  ;;  %v234_v43 = vadd.s32 64, %v58_v8  ;;  %s463_s22 = smov [#allocation7]  }
  0x29   :  { %vm83_vm0 = vcmp.ge.s32.totalorder %v503_v2, 64  ;;  %vm84_vm1 = vcmp.lt.s32.totalorder %v503_v2, 96  ;;  %vm76_vm2 = vcmp.ge.s32.totalorder %v503_v2, 32  ;;  %vm69_vm3 = vcmp.lt.s32.totalorder %v503_v2, 32  ;;  %s320_s23 = sshll.u32 %s463_s22, 4  ;;  %s321_s23 = int_to_ptr.vmem [resolvable:$true] %s320_s23 }
  0x2a   :  { %vm509_vm4 = vmand %vm83_vm0, %vm84_vm1  ;;  %vm77_vm5 = vcmp.lt.s32.totalorder %v503_v2, 64  ;;  %vm90_vm8 = vcmp.ge.s32.totalorder %v503_v2, 96  ;;  %vm65_vm9 = vcmp.lt.s32.totalorder %v62_v4, 4  ;;  %v71_v9 = vsel %vm69_vm3, %v519_v7, -1e+30  ;;  %s425_s24 = scalar_lea.vmem %s321_s23, 16  ;;  %p430_p3 = scmp.lt.s32.totalorder %s321_s23, %s321_s23 }
  0x2b   :  { %vm514_vm7 = vmand %vm76_vm2, %vm77_vm5  ;;  %v86_v10 = vsel %vm509_vm4, %v519_v7, -1e+30  ;;  %v73_v12 = vsel %vm72_vm6, %v71_v9, -inf  ;;  %v93_v14 = vsel %vm90_vm8, %v519_v7, -1e+30  ;;  %v282_v44 = vadd.s32 96, %v58_v8  ;;  %p426_p2 = scmp.ne.s32.totalorder %s321_s23, %s425_s24 }
  0x2c   :  { %v79_v11 = vsel %vm514_vm7, %v519_v7, -1e+30  ;;  %v87_v13 = vsel %vm72_vm6, %v86_v10, -inf  ;;  %74 = vmax.xlane.f32.xlu0 %v73_v12  ;;  %v94_v16 = vsel %vm72_vm6, %v93_v14, -inf  ;;  %vm537_vm11 = vmand %vm65_vm9, %vm111_vm10  ;;  %v460_v45 = vmov 3   ;;  %s429_s25 = scalar_lea.vmem %s321_s23, 32 }
  0x2d   :  { %88 = vmax.xlane.f32.xlu1 %v87_v13  ;;  %v80_v15 = vsel %vm72_vm6, %v79_v11, -inf  ;;  %v543_v18 = vsel %vm537_vm11, 1.0, %v455_v1  ;;  %v549_v20 = vsel %vm537_vm11, 1, %v456_v3  ;;  %p431_p4 = scmp.lt.s32.totalorder %s429_s25, %s425_s24 }
  0x2e   :  { %v128_v19 = vsel %vm114_vm12, %v543_v18, 0.0 }
  0x2f   :  { %p432_p5 = por %p431_p4, %p430_p3 }
  0x30   :  { %81 = vmax.xlane.f32.xlu0 %v80_v15 }
  0x31   :  { %95 = vmax.xlane.f32.xlu1 %v94_v16  ;;  %p433_p6 = pnand %p432_p5, %p426_p2 }
  0x34   :  { %129 = vadd.xlane.f32.xlu0 %v128_v19 }
  0x42   :  { %140 = vperm.xlu1 %364, %v58_v8  }
  0x46   :  { %366 = vset.pattern.permute.xlu1 %v457_v21 }
  0x4a   :  { %144 = vperm.xlu0 %365, %v549_v20  }
  0x4e   :  { %368 = vset.pattern.permute.xlu0 %v458_v22 }
  0xb9   :  { %v552_v23 = vpop.xlane.xlu0 %74 }
  0xba   :  { %v554_v24 = vpop.xlane.xlu1 %88  ;;  %v97_v25 = vsel %vm69_vm3, %v552_v23, -1e+30 }
  0xbd   :  { %v82_v26 = vpop.xlane.xlu0 %81 }
  0xbe   :  { %v559_v27 = vpop.xlane.xlu1 %95  ;;  %v98_v28 = vsel %vm514_vm7, %v82_v26, %v97_v25 }
  0xbf   :  { %v99_v29 = vsel %vm509_vm4, %v554_v24, %v98_v28 }
  0xc0   :  { %v100_v30 = vsel %vm90_vm8, %v559_v27, %v99_v29 }
  0xc1   :  { %v101_v31 = vsub.f32 %v519_v7, %v100_v30  ;;  %v588_v46 = vpop.xlane.xlu0 %129 }
  0xc2   :  { %v590_v47 = vpop.permute.xlu1 %140 }
  0xc3   :  { %v102_v32 = vmul.f32 1.442695, %v101_v31  ;;  %v131_v31 = vrot.slane %v588_v46, 4 }
  0xc5   :  { %371 = vpow2.f32 %v102_v32  ;;  %v132_v32 = vadd.f32 %v131_v31, %v588_v46 }
  0xc9   :  { %v592_v48 = vpop.permute.xlu0 %144 }
  0xcf   :  { %v372_v33 = vpop.eup %371 }
  0xd0   :  { %v148_v34 = vsel %vm514_vm7, %v372_v33, 0.0  ;;  %v104_v35 = vsel %vm69_vm3, %v372_v33, 0.0  ;;  %v245_v38 = vsel %vm90_vm8, %v372_v33, 0.0  ;;  %v197_v39 = vsel %vm509_vm4, %v372_v33, 0.0 }
  0xd1   :  { %v149_v36 = vsel %vm72_vm6, %v148_v34, 0.0  ;;  %v105_v37 = vsel %vm72_vm6, %v104_v35, 0.0  ;;  %v246_v40 = vsel %vm72_vm6, %v245_v38, 0.0  ;;  %v198_v41 = vsel %vm72_vm6, %v197_v39, 0.0 }
  0xd2   :  { %150 = vadd.xlane.f32.xlu1 %v149_v36  ;;  %106 = vadd.xlane.f32.xlu0 %v105_v37  ;;  %vm142_vm3 = vcmp.eq.s32.totalorder %v503_v2, %v590_v47  ;;  %vm146_vm4 = vcmp.eq.s32.totalorder %v592_v48, 1  ;;  %v133_v36 = vrot.slane %v132_v32, 2 }
  0xd3   :  { %vm147_vm5 = vmand %vm142_vm3, %vm146_vm4 }
  0xd6   :  { %247 = vadd.xlane.f32.xlu1 %v246_v40  ;;  %199 = vadd.xlane.f32.xlu0 %v198_v41 }
  0xe7   :  { %188 = vperm.xlu1 %366, %v186_v42  }
  0xeb   :  { %192 = vperm.xlu1 %366, %v549_v20  }
  0xec   :  { %172 = vrot.lane.b32.xlu0 %v543_v18, %s459_s1 }
  0xef   :  { %367 = vset.pattern.permute.xlu1 %v458_v22 }
  0xf0   :  { %236 = vperm.xlu1 %367, %v234_v43  }
  0xf4   :  { %369 = vset.pattern.permute.xlu1 %v460_v45 }
  0xf5   :  { %284 = vperm.xlu1 %369, %v282_v44  }
  0xf9   :  { %288 = vperm.xlu1 %369, %v549_v20  }
  0xfd   :  { %220 = vrot.lane.b32.xlu1 %v543_v18, %s461_s4 }
 0x15f   :  { %v151_v49 = vpop.xlane.xlu1 %150  ;;  %v107_v50 = vpop.xlane.xlu0 %106 }
 0x160   :  { %373 = vlog2.f32 %v151_v49 }
 0x163   :  { %v248_v51 = vpop.xlane.xlu1 %247  ;;  %v200_v52 = vpop.xlane.xlu0 %199 }
 0x164   :  { %375 = vlog2.f32 %v248_v51 }
 0x165   :  { %377 = vlog2.f32 %v200_v52 }
 0x166   :  { %379 = vlog2.f32 %v107_v50 }
 0x167   :  { %v189_v53 = vpop.permute.xlu1 %188  ;;  %v173_v54 = vpop.permute.xlu0 %172 }
 0x168   :  { %v175_v55 = vsel %vm114_vm12, %v173_v54, 0.0  ;;  %vm190_vm13 = vcmp.eq.s32.totalorder %v503_v2, %v189_v53 }
 0x169   :  { %176 = vadd.xlane.f32.xlu0 %v175_v55 }
 0x16a   :  { %v374_v56 = vpop.eup %373 }
 0x16b   :  { %v153_v57 = vmul.f32 0.6931472, %v374_v56  ;;  %v193_v58 = vpop.permute.xlu1 %192 }
 0x16c   :  { %vm194_vm14 = vcmp.eq.s32.totalorder %v193_v58, 1 }
 0x16d   :  { %vm596_vm15 = vmand %vm190_vm13, %vm194_vm14  ;;  %v154_v60 = vadd.f32 %v153_v57, %v82_v26 }
 0x16e   :  { %v376_v61 = vpop.eup %375  ;;  %vm196_vm7 = vmor %vm147_vm5, %vm596_vm15 }
 0x16f   :  { %v378_v62 = vpop.eup %377  ;;  %v155_v63 = vsel %vm537_vm11, %v154_v60, 0.0  ;;  %v237_v0 = vpop.permute.xlu1 %236  ;;  %v250_v1 = vmul.f32 0.6931472, %v376_v61 }
 0x170   :  { %v202_v3 = vmul.f32 0.6931472, %v378_v62  ;;  %157 = vrot.lane.b32.xlu1 %v155_v63, %s459_s1  ;;  %v380_v15 = vpop.eup %379  ;;  %vm238_vm8 = vcmp.eq.s32.totalorder %v503_v2, %v237_v0 }
 0x171   :  { %v251_v6 = vadd.f32 %v250_v1, %v559_v27  ;;  %v109_v19 = vmul.f32 0.6931472, %v380_v15 }
 0x172   :  { %v203_v4 = vadd.f32 %v202_v3, %v554_v24 }
 0x173   :  { %v252_v9 = vsel %vm537_vm11, %v251_v6, 0.0  ;;  %v110_v22 = vadd.f32 %v109_v19, %v552_v23 }
 0x174   :  { %v204_v5 = vsel %vm537_vm11, %v203_v4, 0.0  ;;  %v285_v8 = vpop.permute.xlu1 %284 }
 0x175   :  { %206 = vrot.lane.b32.xlu1 %v204_v5, %s461_s4  ;;  %vm286_vm0 = vcmp.eq.s32.totalorder %v503_v2, %v285_v8 }
 0x178   :  { %v289_v10 = vpop.permute.xlu1 %288 }
 0x179   :  { %254 = vrot.lane.b32.xlu1 %v252_v9, %s462_s5  ;;  %vm290_vm1 = vcmp.eq.s32.totalorder %v289_v10, 1 }
 0x17a   :  { %vm611_vm2 = vmand %vm286_vm0, %vm290_vm1 }
 0x17c   :  { %v221_v12 = vpop.permute.xlu1 %220 }
 0x17d   :  { %268 = vrot.lane.b32.xlu1 %v543_v18, %s462_s5  ;;  %v223_v13 = vsel %vm114_vm12, %v221_v12, 0.0  ;;  %v113_v18 = vsel %vm537_vm11, %v110_v22, 0.0 }
 0x17f   :  { %240 = vperm.xlu0 %368, %v549_v20   ;;  %v115_v20 = vsel %vm114_vm12, %v113_v18, 0.0 }
 0x183   :  { %370 = vset.pattern.permute.xlu0 %v460_v45  ;;  %v134_v45 = vadd.f32 %v133_v36, %v132_v32 }
 0x185   :  { %v135_v53 = vrot.slane %v134_v45, 1 }
 0x187   :  { %v136_v0 = vadd.f32 %v135_v53, %v134_v45 }
 0x19e   :  { %224 = vadd.xlane.f32.xlu0 %v223_v13 }
 0x1e2   :  { %v158_v14 = vpop.permute.xlu1 %157 }
 0x1e3   :  { %v160_v26 = vsel %vm114_vm12, %v158_v14, 0.0 }
 0x1e7   :  { %v207_v16 = vpop.permute.xlu1 %206 }
 0x1e8   :  { %v209_v23 = vsel %vm114_vm12, %v207_v16, 0.0 }
 0x1eb   :  { %v255_v21 = vpop.permute.xlu1 %254 }
 0x1ec   :  { %v257_v17 = vsel %vm114_vm12, %v255_v21, 0.0 }
 0x1ef   :  { %v269_v24 = vpop.permute.xlu1 %268 }
 0x1f0   :  { %v271_v25 = vsel %vm114_vm12, %v269_v24, 0.0  ;;  %vm305_vm12 = vcmp.eq.s32.totalorder %v503_v2, 0 }
 0x1f1   :  { %272 = vadd.xlane.f32.xlu1 %v271_v25 }
 0x1f5   :  { %116 = vadd.xlane.f32.xlu1 %v115_v20 }
 0x1f6   :  { %v177_v27 = vpop.xlane.xlu0 %176 }
 0x1f7   :  { %v178_v33 = vrot.slane %v177_v27, 4 }
 0x1f9   :  { %161 = vadd.xlane.f32.xlu1 %v160_v26  ;;  %v179_v37 = vadd.f32 %v178_v33, %v177_v27 }
 0x1fb   :  { %v180_v42 = vrot.slane %v179_v37, 2 }
 0x1fd   :  { %210 = vadd.xlane.f32.xlu1 %v209_v23  ;;  %v181_v54 = vadd.f32 %v180_v42, %v179_v37 }
 0x1fe   :  { %v241_v28 = vpop.permute.xlu0 %240 }
 0x1ff   :  { %vm242_vm9 = vcmp.eq.s32.totalorder %v241_v28, 1  ;;  %v182_v1 = vrot.slane %v181_v54, 1 }
 0x200   :  { %vm243_vm10 = vmand %vm238_vm8, %vm242_vm9 }
 0x201   :  { %vm244_vm11 = vmor %vm196_vm7, %vm243_vm10  ;;  %258 = vadd.xlane.f32.xlu1 %v257_v17  ;;  %v183_v10 = vadd.f32 %v182_v1, %v181_v54 }
 0x202   :  { %vm292_vm13 = vmor %vm244_vm11, %vm611_vm2 }
 0x203   :  { %v293_v29 = vsel %vm292_vm13, %v519_v7, 0.0 }
 0x204   :  { %v294_v30 = vsel %vm72_vm6, %v293_v29, 0.0  ;;  %vm306_vm6 = vcmp.eq.s32.totalorder %v503_v2, 1 }
 0x205   :  { %295 = vadd.xlane.f32.xlu1 %v294_v30  ;;  %v311_v30 = vld [vmem:[#allocation7] sm:$0x1] }
 0x22b   :  { %v225_v35 = vpop.xlane.xlu0 %224 }
 0x22c   :  { %v226_v38 = vrot.slane %v225_v35, 4 }
 0x22e   :  { %v227_v43 = vadd.f32 %v226_v38, %v225_v35 }
 0x230   :  { %v228_v51 = vrot.slane %v227_v43, 2 }
 0x232   :  { %v229_v61 = vadd.f32 %v228_v51, %v227_v43 }
 0x234   :  { %v230_v12 = vrot.slane %v229_v61, 1 }
 0x236   :  { %v231_v24 = vadd.f32 %v230_v12, %v229_v61 }
 0x27e   :  { %v273_v34 = vpop.xlane.xlu1 %272 }
 0x27f   :  { %v274_v44 = vrot.slane %v273_v34, 4 }
 0x281   :  { %v275_v46 = vadd.f32 %v274_v44, %v273_v34 }
 0x282   :  { %v117_v39 = vpop.xlane.xlu1 %116 }
 0x283   :  { %v118_v40 = vrot.slane %v117_v39, 4  ;;  %v276_v62 = vrot.slane %v275_v46, 2 }
 0x285   :  { %v119_v41 = vadd.f32 %v118_v40, %v117_v39  ;;  %v277_v13 = vadd.f32 %v276_v62, %v275_v46 }
 0x286   :  { %v162_v7 = vpop.xlane.xlu1 %161 }
 0x287   :  { %v120_v47 = vrot.slane %v119_v41, 2  ;;  %v163_v48 = vrot.slane %v162_v7, 4  ;;  %v278_v25 = vrot.slane %v277_v13, 1 }
 0x289   :  { %v164_v49 = vadd.f32 %v163_v48, %v162_v7  ;;  %v121_v50 = vadd.f32 %v120_v47, %v119_v41  ;;  %v279_v23 = vadd.f32 %v278_v25, %v277_v13 }
 0x28a   :  { %v211_v52 = vpop.xlane.xlu1 %210 }
 0x28b   :  { %v165_v55 = vrot.slane %v164_v49, 2  ;;  %v212_v56 = vrot.slane %v211_v52, 4  ;;  %v122_v57 = vrot.slane %v121_v50, 1 }
 0x28d   :  { %v213_v58 = vadd.f32 %v212_v56, %v211_v52  ;;  %v123_v59 = vadd.f32 %v122_v57, %v121_v50  ;;  %v166_v60 = vadd.f32 %v165_v55, %v164_v49 }
 0x28e   :  { %v259_v63 = vpop.xlane.xlu1 %258 }
 0x28f   :  { %v214_v3 = vrot.slane %v213_v58, 2  ;;  %v260_v4 = vrot.slane %v259_v63, 4  ;;  %335 = vpush %v123_v59  ;;  %v167_v5 = vrot.slane %v166_v60, 1 }
 0x290   :  { %337 = vpush %v136_v0 }
 0x291   :  { %v261_v6 = vadd.f32 %v260_v4, %v259_v63  ;;  %v168_v8 = vadd.f32 %v167_v5, %v166_v60  ;;  %v215_v9 = vadd.f32 %v214_v3, %v213_v58 }
 0x292   :  { %v296_v11 = vpop.xlane.xlu1 %295 }
 0x293   :  { %v262_v14 = vrot.slane %v261_v6, 2  ;;  %339 = vpush %v168_v8  ;;  %v297_v15 = vrot.slane %v296_v11, 4  ;;  %v216_v16 = vrot.slane %v215_v9, 1 }
 0x294   :  { %341 = vpush %v183_v10 }
 0x295   :  { %v298_v19 = vadd.f32 %v297_v15, %v296_v11  ;;  %v217_v21 = vadd.f32 %v216_v16, %v215_v9  ;;  %v263_v22 = vadd.f32 %v262_v14, %v261_v6 }
 0x297   :  { %v299_v18 = vrot.slane %v298_v19, 2  ;;  %343 = vpush %v217_v21  ;;  %v264_v20 = vrot.slane %v263_v22, 1 }
 0x298   :  { %345 = vpush %v231_v24 }
 0x299   :  { %v300_v26 = vadd.f32 %v299_v18, %v298_v19  ;;  %v265_v27 = vadd.f32 %v264_v20, %v263_v22 }
 0x29b   :  { %347 = vpush %v265_v27  ;;  %v301_v28 = vrot.slane %v300_v26, 1 }
 0x29c   :  { %349 = vpush %v279_v23 }
 0x29d   :  { %v302_v17 = vadd.f32 %v301_v28, %v300_v26 }
 0x29f   :  { %351 = vpush %v302_v17 }
 0x2c0   :  { %s336_s6 = spop %335 }
 0x2c1   :  { %s338_s7 = spop %337 }
 0x2c4   :  { %s340_s8 = spop %339 }
 0x2c5   :  { %s342_s9 = spop %341  ;;  %s170_s13 = sadd.f32 %s340_s8, %s336_s6 }
 0x2c6   :  { %s185_s12 = sadd.f32 %s342_s9, %s338_s7 }
 0x2c8   :  { %s344_s10 = spop %343 }
 0x2c9   :  { %s346_s11 = spop %345  ;;  %s219_s16 = sadd.f32 %s344_s10, %s170_s13 }
 0x2ca   :  { %s233_s14 = sadd.f32 %s346_s11, %s185_s12 }
 0x2cc   :  { %s348_s15 = spop %347 }
 0x2cd   :  { %s350_s17 = spop %349  ;;  %s267_s19 = sadd.f32 %s348_s15, %s219_s16 }
 0x2ce   :  { %s281_s18 = sadd.f32 %s350_s17, %s233_s14 }
 0x2d0   :  { %v307_v29 = vstv %s281_s18  ;;  %s352_s20 = spop %351 }
 0x2d1   :  { %s304_s21 = ssub.f32 %s267_s19, %s352_s20  ;;  %v308_v31 = vsel %vm306_vm6, %v307_v29, 0.0 }
 0x2d3   :  { %v309_v32 = vstv %s304_s21 }
 0x2d4   :  { %v310_v33 = vsel %vm305_vm12, %v309_v32, %v308_v31 }
 0x2d5   :  { %v312_v34 = vadd.f32 %v311_v30, %v310_v33 }
 0x2d7   :  { %313 = vst [vmem:[#allocation7] sm:$0x1] %v312_v34 }
 0x2d8   :  { %436 = shalt.err (!%p433_p6)
}
 0x2d9   :  { %s437_s28 = scalar_lea.hbm %s654_s2, 16 }
 0x2da   :  { %p438_p7 = scmp.ne.s32.totalorder %s654_s2, %s437_s28  ;;  %p441_p8 = scmp.lt.u32.totalorder %s437_s28, %s654_s2 }
 0x2dc   :  { %p443_p9 = pnand %p441_p8, %p438_p7 }
 0x2de   :  { %446 = shalt.err (!%p443_p9)
}
 0x2df   :  { %323 = dma.vmem_to_hbm [thread:$0]  %s321_s23, 16, %s654_s2, [#allocation4]  }
 0x2e0   :  { %451 = dma.done.wait [#allocation4], 16  }
 0x2e1   :  { %452 = vsyncadd [#allocation4], 4294967280 }
 0x2e2   :  { %327 = vsyncpa [#allocation3], 1 }
 0x2e3   :  { %328 = vsyncpa [#allocation6], 1 }
 0x2e4   :  { %329 = vsyncpa [#allocation4], 1 }

</bundles_post_ra>
